<compile_context>
chip_gen: v6e
topology: v6e:2x2x1
jax: 0.10.0
libtpu: 0.0.40
codegen_flags: <defaults>
</compile_context>

<pallas_src>
import functools
import math

import jax
import jax.numpy as jnp
from jax.experimental import pallas as pl
from jax.experimental.pallas import tpu as pltpu

_EPS = 1e-6  # matches F.pairwise_distance default eps


def _loss_kernel(label_ref, t0_ref, t1_ref, out_ref, acc_ref, *,
                 threshold, margin, valid_elems, tile_rows, needs_mask):
    # label_ref: (B,) f32 in SMEM
    # t0_ref, t1_ref: (1, TR, 128) in VMEM (one pixel tile of one sample)
    # out_ref: (1, 1, 128) f32 in VMEM (per-sample loss, lane-broadcast)
    # acc_ref: (TR, 128) f32 VMEM scratch (per-sample partial sums of squares)
    b = pl.program_id(0)
    j = pl.program_id(1)
    nj = pl.num_programs(1)

    @pl.when(j == 0)
    def _():
        acc_ref[...] = jnp.zeros_like(acc_ref)

    diff = (t0_ref[0].astype(jnp.float32)
            - t1_ref[0].astype(jnp.float32)
            + jnp.float32(_EPS))
    if needs_mask:
        # Zero contributions from padded / out-of-bounds elements.  Static
        # Python flag: this code is only emitted when a ragged tail exists.
        r = jax.lax.broadcasted_iota(jnp.int32, (tile_rows, 128), 0)
        c = jax.lax.broadcasted_iota(jnp.int32, (tile_rows, 128), 1)
        gidx = (j * tile_rows + r) * 128 + c
        diff = jnp.where(gidx < valid_elems, diff, 0.0)

    # Wide, dependency-free accumulate (one independent vadd per vreg).
    acc_ref[...] += diff * diff

    @pl.when(j == nj - 1)
    def _():
        # One cross-sublane + cross-lane reduce per sample (XLU), then the
        # finalize math stays vector-shaped (VPU/EUP) - no scalar sqrt.
        col = jnp.sum(acc_ref[...], axis=0, keepdims=True)      # (1, 128)
        sumsq = jnp.sum(col, axis=1, keepdims=True)              # (1, 1)
        dist = jnp.sqrt(sumsq)                                   # (1, 1)
        lab = label_ref[b] * jnp.ones((1, 1), jnp.float32)       # splat scalar
        sim = jnp.maximum(dist - jnp.float32(threshold), 0.0)
        dis = jnp.maximum(jnp.float32(margin) - dist, 0.0)
        loss = lab * sim * sim + (1.0 - lab) * dis * dis         # (1, 1)
        out_ref[...] = jnp.broadcast_to(loss, out_ref.shape)


def _vmem_budget_bytes():
    """Scoped-VMEM budget for this kernel, gated on the actual chip."""
    try:
        phys = int(pltpu.get_tpu_info().vmem_capacity_bytes)
    except Exception:
        phys = 64 << 20  # v7x per-TC physical; conservative fallback
    # Leave headroom for compiler internal scratch / temporaries.
    return min(int(phys * 0.45), 28 << 20)


def _pick_tile_rows(rows_hbm, sublane, itemsize, budget_bytes, max_tr=4096):
    """Pick TR (rows of 128 lanes per pixel tile, sublane-aligned, <= rows_hbm).

    Per-row VMEM: 2 inputs x 2 pipeline buffers + f32 accumulator + allowance
    for elementwise temporaries.  TR=4096 f32 => 2 MiB/map/step (4 MiB moved
    per step), ~10-18 MiB resident -> fits all gens with a 28 MiB scoped limit.
    """
    bytes_per_row = 2 * 2 * 128 * itemsize + 128 * 4 + 3 * 128 * 4
    cap = min(max_tr, budget_bytes // bytes_per_row)
    cap = max(sublane, (cap // sublane) * sublane)
    fit = max(sublane, (rows_hbm // sublane) * sublane)
    if fit <= cap:
        return fit
    # Prefer a divisor of rows_hbm so the last tile is full (no tail mask).
    lo = max(sublane, cap // 2)
    for tr in range(cap, lo - 1, -sublane):
        if rows_hbm % tr == 0:
            return tr
    return cap


def contrastive_threshold_loss(out_vec_t0, out_vec_t1, label, *,
                               hingethresh=0.0, margin=2.0, dist_flag="l2"):
    """Pallas TPU implementation of contrastiveThresholdLoss.forward."""
    assert dist_flag == "l2", "only 'l2' distance implemented in the kernel"
    batch = out_vec_t0.shape[0]
    d = math.prod(out_vec_t0.shape[1:])

    t0 = out_vec_t0.reshape(batch, d)           # free reshape, no transpose/copy
    t1 = out_vec_t1.reshape(batch, d)
    label = label.reshape(batch).astype(jnp.float32)

    itemsize = jnp.dtype(t0.dtype).itemsize
    sublane = max(8, 32 // max(itemsize, 1))    # 8 for f32, 16 bf16, 32 int8

    rows = -(-d // 128)
    rows_hbm = max(rows, sublane)               # keep at least one legal tile
    d_hbm = rows_hbm * 128

    budget = _vmem_budget_bytes()
    tr = _pick_tile_rows(rows_hbm, sublane, itemsize, budget)
    num_tiles = -(-rows_hbm // tr)

    if d_hbm != d:
        # Only triggered when D is not a multiple of 128 (or is tiny).  The
        # padded elements are zeroed by the in-kernel mask, so the pad value
        # is irrelevant (no fragile eps-cancellation trick).
        t0 = jnp.pad(t0, ((0, 0), (0, d_hbm - d)))
        t1 = jnp.pad(t1, ((0, 0), (0, d_hbm - d)))
    needs_mask = (d_hbm != d) or (rows_hbm % tr != 0)

    t0 = t0.reshape(batch, rows_hbm, 128)
    t1 = t1.reshape(batch, rows_hbm, 128)

    kernel = functools.partial(
        _loss_kernel, threshold=float(hingethresh), margin=float(margin),
        valid_elems=d, tile_rows=tr, needs_mask=needs_mask)

    per_sample = pl.pallas_call(
        kernel,
        out_shape=jax.ShapeDtypeStruct((batch, 1, 128), jnp.float32),
        grid_spec=pltpu.PrefetchScalarGridSpec(
            num_scalar_prefetch=0,
            grid=(batch, num_tiles),
            in_specs=[
                pl.BlockSpec(memory_space=pltpu.SMEM),                # label (B,)
                pl.BlockSpec((1, tr, 128), lambda b, j: (b, j, 0)),   # t0 tile
                pl.BlockSpec((1, tr, 128), lambda b, j: (b, j, 0)),   # t1 tile
            ],
            out_specs=pl.BlockSpec((1, 1, 128), lambda b, j: (b, 0, 0)),
            scratch_shapes=[pltpu.VMEM((tr, 128), jnp.float32)],
        ),
        compiler_params=pltpu.CompilerParams(
            dimension_semantics=("parallel", "arbitrary"),
            vmem_limit_bytes=budget),
        cost_estimate=pl.CostEstimate(
            flops=4 * batch * d_hbm + 16 * batch,
            transcendentals=batch,
            bytes_accessed=2 * batch * d_hbm * itemsize
                           + batch * 4 + batch * 128 * 4),
    )(label, t0, t1)

    # Tiny epilogue: mean over B per-sample losses.
    return jnp.mean(per_sample[:, 0, 0])


def _reference(t0, t1, label, thresh, margin):
    n = t0.shape[0]
    x0 = t0.reshape(n, -1).astype(jnp.float32)
    x1 = t1.reshape(n, -1).astype(jnp.float32)
    dist = jnp.sqrt(jnp.sum((x0 - x1 + _EPS) ** 2, axis=1))
    sim = jnp.maximum(dist - thresh, 0.0)
    dis = jnp.maximum(margin - dist, 0.0)
    return jnp.mean(label * sim ** 2 + (1.0 - label) * dis ** 2)


if __name__ == "__main__":
    key = jax.random.PRNGKey(0)

    test_shapes = [
        (2, 4, 16, 16),   # D = 1024: full tiles, no pad, no mask
        (3, 3, 10, 10),   # D = 300 : pad to one (8,128) slab + in-kernel mask
        (2, 1152),        # D = 1152: rows=9, partial last tile, mask, no pad
    ]

    ok = True
    for shape in test_shapes:
        key, k0, k1, k2 = jax.random.split(key, 4)
        n = shape[0]
        x0 = jax.random.normal(k0, shape, dtype=jnp.float32)
        x1 = jax.random.normal(k1, shape, dtype=jnp.float32)
        lab = (jax.random.uniform(k2, (n,)) > 0.5).astype(jnp.float32)

        loss = contrastive_threshold_loss(
            x0, x1, lab, hingethresh=0.3, margin=2.0, dist_flag="l2")
        loss = jax.block_until_ready(loss)
        ref = _reference(x0, x1, lab, 0.3, 2.0)
        if not jnp.allclose(loss, ref, rtol=1e-5, atol=1e-5):
            ok = False
            print("MISMATCH", shape, float(loss), float(ref))

    if ok:
        print("KERNEL_OK")
</pallas_src>

<mosaic_0001>
module attributes {stable_mosaic.version = 11 : i64} {
  func.func @_loss_kernel(%arg0: i32, %arg1: i32, %arg2: memref<2xf32, #tpu.memory_space<smem>>, %arg3: memref<1x8x128xf32, #tpu.memory_space<vmem>>, %arg4: memref<1x8x128xf32, #tpu.memory_space<vmem>>, %arg5: memref<1x1x128xf32, #tpu.memory_space<vmem>>, %arg6: memref<8x128xf32, #tpu.memory_space<vmem>>) attributes {dimension_semantics = [#tpu.dimension_semantics<parallel>, #tpu.dimension_semantics<arbitrary>], iteration_bounds = array<i64: 2, 1>, scalar_prefetch = 0 : i64, scratch_operands = 1 : i64, tpu.core_type = #tpu.core_type<tc>, window_params = [{transform_indices = @transform_0, window_bounds = array<i64: 2>}, {transform_indices = @transform_1, window_bounds = array<i64: 1, 8, 128>}, {transform_indices = @transform_2, window_bounds = array<i64: 1, 8, 128>}, {transform_indices = @transform_3, window_bounds = array<i64: 1, 1, 128>}]} {
    %c0_i32 = arith.constant 0 : i32
    %0 = arith.cmpi eq, %arg1, %c0_i32 : i32
    %1 = arith.extui %0 : i1 to i32
    %c0_i32_0 = arith.constant 0 : i32
    %2 = arith.cmpi ne, %1, %c0_i32_0 : i32
    scf.if %2 {
      %cst_12 = arith.constant 0.000000e+00 : f32
      %17 = vector.broadcast %cst_12 : f32 to vector<8x128xf32>
      %c0_13 = arith.constant 0 : index
      %c0_14 = arith.constant 0 : index
      %18 = vector.load %arg6[%c0_13, %c0_14] : memref<8x128xf32, #tpu.memory_space<vmem>>, vector<8x128xf32>
      tpu.vector_store %arg6[%c0_13, %c0_14], %17 {strides = array<i32>} : memref<8x128xf32, #tpu.memory_space<vmem>>, vector<8x128xf32>,
    } else {
    }
    %c0 = arith.constant 0 : index
    %c0_1 = arith.constant 0 : index
    %c0_2 = arith.constant 0 : index
    %3 = vector.load %arg3[%c0, %c0_1, %c0_2] : memref<1x8x128xf32, #tpu.memory_space<vmem>>, vector<1x8x128xf32>
    %4 = vector.shape_cast %3 : vector<1x8x128xf32> to vector<8x128xf32>
    %c0_3 = arith.constant 0 : index
    %c0_4 = arith.constant 0 : index
    %c0_5 = arith.constant 0 : index
    %5 = vector.load %arg4[%c0_3, %c0_4, %c0_5] : memref<1x8x128xf32, #tpu.memory_space<vmem>>, vector<1x8x128xf32>
    %6 = vector.shape_cast %5 : vector<1x8x128xf32> to vector<8x128xf32>
    %7 = arith.subf %4, %6 : vector<8x128xf32>
    %cst = arith.constant 9.99999997E-7 : f32
    %8 = vector.broadcast %cst : f32 to vector<8x128xf32>
    %9 = arith.addf %7, %8 : vector<8x128xf32>
    %c0_6 = arith.constant 0 : index
    %c0_7 = arith.constant 0 : index
    %10 = vector.load %arg6[%c0_6, %c0_7] : memref<8x128xf32, #tpu.memory_space<vmem>>, vector<8x128xf32>
    %11 = arith.mulf %9, %9 : vector<8x128xf32>
    %12 = arith.addf %10, %11 : vector<8x128xf32>
    %c0_8 = arith.constant 0 : index
    %c0_9 = arith.constant 0 : index
    %13 = vector.load %arg6[%c0_8, %c0_9] : memref<8x128xf32, #tpu.memory_space<vmem>>, vector<8x128xf32>
    tpu.vector_store %arg6[%c0_8, %c0_9], %12 {strides = array<i32>} : memref<8x128xf32, #tpu.memory_space<vmem>>, vector<8x128xf32>,
    %c0_i32_10 = arith.constant 0 : i32
    %14 = arith.cmpi eq, %arg1, %c0_i32_10 : i32
    %15 = arith.extui %14 : i1 to i32
    %c0_i32_11 = arith.constant 0 : i32
    %16 = arith.cmpi ne, %15, %c0_i32_11 : i32
    scf.if %16 {
      %c0_12 = arith.constant 0 : index
      %c0_13 = arith.constant 0 : index
      %17 = vector.load %arg6[%c0_12, %c0_13] : memref<8x128xf32, #tpu.memory_space<vmem>>, vector<8x128xf32>
      %cst_14 = arith.constant dense<0.000000e+00> : vector<128xf32>
      %18 = vector.multi_reduction <add>, %17, %cst_14 [0] : vector<8x128xf32> to vector<128xf32>
      %19 = vector.shape_cast %18 : vector<128xf32> to vector<1x128xf32>
      %cst_15 = arith.constant dense<0.000000e+00> : vector<1xf32>
      %20 = vector.multi_reduction <add>, %19, %cst_15 [1] : vector<1x128xf32> to vector<1xf32>
      %21 = vector.shape_cast %20 : vector<1xf32> to vector<1x1xf32>
      %22 = math.sqrt %21 : vector<1x1xf32>
      %23 = arith.index_cast %arg0 : i32 to index
      %24 = memref.load %arg2[%23] : memref<2xf32, #tpu.memory_space<smem>>
      %cst_16 = arith.constant 1.000000e+00 : f32
      %25 = vector.broadcast %cst_16 : f32 to vector<1x1xf32>
      %26 = vector.broadcast %24 : f32 to vector<1x1xf32>
      %27 = arith.mulf %26, %25 : vector<1x1xf32>
      %cst_17 = arith.constant 3.000000e-01 : f32
      %28 = vector.broadcast %cst_17 : f32 to vector<1x1xf32>
      %29 = arith.subf %22, %28 : vector<1x1xf32>
      %cst_18 = arith.constant 0.000000e+00 : f32
      %30 = vector.broadcast %cst_18 : f32 to vector<1x1xf32>
      %31 = arith.maximumf %29, %30 : vector<1x1xf32>
      %cst_19 = arith.constant 2.000000e+00 : f32
      %32 = vector.broadcast %cst_19 : f32 to vector<1x1xf32>
      %33 = arith.subf %32, %22 : vector<1x1xf32>
      %cst_20 = arith.constant 0.000000e+00 : f32
      %34 = vector.broadcast %cst_20 : f32 to vector<1x1xf32>
      %35 = arith.maximumf %33, %34 : vector<1x1xf32>
      %36 = arith.mulf %27, %31 : vector<1x1xf32>
      %37 = arith.mulf %36, %31 : vector<1x1xf32>
      %cst_21 = arith.constant 1.000000e+00 : f32
      %38 = vector.broadcast %cst_21 : f32 to vector<1x1xf32>
      %39 = arith.subf %38, %27 : vector<1x1xf32>
      %40 = arith.mulf %39, %35 : vector<1x1xf32>
      %41 = arith.mulf %40, %35 : vector<1x1xf32>
      %42 = arith.addf %37, %41 : vector<1x1xf32>
      %43 = vector.shape_cast %42 : vector<1x1xf32> to vector<1x1x1xf32>
      %44 = vector.broadcast %43 : vector<1x1x1xf32> to vector<1x1x128xf32>
      %c0_22 = arith.constant 0 : index
      %c0_23 = arith.constant 0 : index
      %c0_24 = arith.constant 0 : index
      %45 = vector.load %arg5[%c0_22, %c0_23, %c0_24] : memref<1x1x128xf32, #tpu.memory_space<vmem>>, vector<1x1x128xf32>
      tpu.vector_store %arg5[%c0_22, %c0_23, %c0_24], %44 {strides = array<i32>} : memref<1x1x128xf32, #tpu.memory_space<vmem>>, vector<1x1x128xf32>,
    } else {
    }
    return
  }
  func.func @transform_0(%arg0: i32, %arg1: i32) -> i32 {
    %c0_i32 = arith.constant 0 : i32
    %c0_i32_0 = arith.constant 0 : i32
    return %c0_i32 : i32
  }
  func.func @transform_1(%arg0: i32, %arg1: i32) -> (i32, i32, i32) {
    %c0_i32 = arith.constant 0 : i32
    %c0_i32_0 = arith.constant 0 : i32
    return %arg0, %arg1, %c0_i32 : i32, i32, i32
  }
  func.func @transform_2(%arg0: i32, %arg1: i32) -> (i32, i32, i32) {
    %c0_i32 = arith.constant 0 : i32
    %c0_i32_0 = arith.constant 0 : i32
    return %arg0, %arg1, %c0_i32 : i32, i32, i32
  }
  func.func @transform_3(%arg0: i32, %arg1: i32) -> (i32, i32, i32) {
    %c0_i32 = arith.constant 0 : i32
    %c0_i32_0 = arith.constant 0 : i32
    %c0_i32_1 = arith.constant 0 : i32
    return %arg0, %c0_i32, %c0_i32_0 : i32, i32, i32
  }
}

</mosaic_0001>

<bundles_post_ra>
// kernel: tpu_custom_call.1
= control target key start
LH: loop header
LB: loop body
LE: loop exit
PB: predicated region body
PF: predicated region fallthrough
CT: control target
= control target key end

     0   :  { %s886_s0 = inlined_call_operand.hbm [shape: f32[2], index: 0, kind: input, shape index: {}]   ;;  %s887_s1 = inlined_call_operand.hbm [shape: f32[2,8,128], index: 1, kind: input, shape index: {}]   ;;  %s888_s2 = inlined_call_operand.hbm [shape: f32[2,8,128], index: 2, kind: input, shape index: {}]   ;;  %s889_s3 = inlined_call_operand.hbm [shape: f32[2,1,128], index: 3, kind: output, shape index: {}]  }
   0x1   :  { %890 = sst [smem:[#allocation15_spill]] %s886_s0 }
   0x2   :  { %8 = vsyncpa [#allocation6], 0 }
   0x3   :  { %9 = vsyncpa [#allocation4], 0 }
   0x4   :  { %11 = vsyncpa [#allocation4 + $0x1], 0 }
   0x5   :  { %12 = vsyncpa [#allocation9], 0 }
   0x6   :  { %14 = vsyncpa [#allocation9 + $0x1], 0 }
   0x7   :  { %15 = vsyncpa [#allocation5], 0 }
   0x8   :  { %17 = vsyncpa [#allocation5 + $0x1], 0  ;;  %s699_s12 = smov 0   ;;  %s701_s13 = smov 0  }
   0x9   :  { %s703_s14 = smov 0   ;;  %s705_s15 = smov 0  }
   0xa   :  { %s707_s16 = smov 0   ;;  %s709_s17 = smov 0  }
   0xb LB: > { %s421_s18 = sadd.s32 4294967295, %s673_s17   ;;  %s422_s19 = sadd.s32 4294967294, %s673_s17   ;;  %s673_s17 = sphi %s709_s17, %s23_s17   ;;  %s669_s16 = sphi %s707_s16, %s905_s16   ;;  %s665_s15 = sphi %s705_s15, %s904_s15   ;;  %s661_s14 = sphi %s703_s14, %s903_s14   ;;  %s657_s13 = sphi %s701_s13, %s902_s13   ;;  %s653_s12 = sphi %s699_s12, %s901_s12  }
   0xc   : > { %p72_p0 = scmp.ne.s32.totalorder %s661_s14, %s657_s13  ;;  %p78_p1 = scmp.ne.s32.totalorder %s657_s13, %s653_s12 }
   0xd   : > { %p735_p2 = scmp.eq.s32.totalorder %s421_s18, 0  ;;  %p130_p3 = scmp.eq.s32.totalorder %s421_s18, 1 }
   0xe   : > { %p136_p4 = scmp.eq.s32.totalorder %s422_s19, 1  ;;  %p423_p5 = scmp.ge.s32.totalorder %s673_s17, 1 }
   0xf   : > { %p742_p6 = por %p735_p2, %p78_p1  ;;  %p749_p7 = por %p130_p3, %p72_p0 }
  0x10   : > { %p753_p8 = por %p136_p4, %p78_p1  ;;  %p143_p9 = scmp.lt.s32.totalorder %s673_s17, 3 }
  0x11   : > { %s65_s25 = sadd.s32 1, %s661_s14  ;;  %s35_s26 = sadd.s32 1, %s669_s16 }
  0x12   : > { %s894_s23 = scalar_select %p753_p8, 1, 0 }
  0x13   : > { %p758_p10 = pnand %p423_p5, %p143_p9  ;;  %p73_p13 = scmp.eq.s32.totalorder %s673_s17, 0 }
  0x14   : > { %p37_p3 = scmp.ge.s32.totalorder %s35_s26, 2  ;;  %p464_p5 = scmp.lt.s32.totalorder %s673_s17, 2 }
  0x15   : > { %p448_p12 = pneg %p758_p10  ;;  %p773_p4 = por %p73_p13, %p72_p0 }
  0x16   : > { %s779_s28 = sand.u32 1, %s661_s14   ;;  %s675_s29 = smov [#allocation3]  }
  0x17   : > { %p449_p1 = pnand %p448_p12, %p735_p2  ;;  %s897_s0 = sld [smem:[#allocation15_spill]] }
  0x18   : > { %s907_s26 = smov (%p37_p3, %s35_s26), 0  ;;  %s426_s5 = sshll.u32 %s779_s28, 3 }
  0x19   : > { %s60_s6 = ssub.s32 %s669_s16, %s907_s26  ;;  %s427_s7 = sshll.u32 %s669_s16, 7 }
  0x1a   : > { %p63_p0 = scmp.eq.s32.totalorder %s60_s6, 0  ;;  %s175_s10 = scalar_lea.hbm %s887_s1, %s427_s7 }
  0x1b   : > { %s169_s11 = scalar_lea.vmem [#allocation7], %s426_s5  ;;  %p800_p9 = pnand %p464_p5, %p773_p4 }
  0x1c   : > { %s177_s18 = sshll.u32 %s169_s11, 4  ;;  %s807_s6 = scalar_lea.hbm %s888_s2, %s427_s7  ;;  %s178_s18 = int_to_ptr.vmem [resolvable:$true] %s177_s18 }
  0x1d   : > { %451 = dma.hbm_to_smem (!%p449_p1), %s897_s0, 16, %s675_s29, [#allocation6]  }
  0x1e   : > { %s794_s19 = scalar_select %p63_p0, %s661_s14, %s65_s25  }
  0x1f   : > { %s166_s8 = scalar_lea.sflag [#allocation4], %s779_s28  ;;  %p531_p12 = pneg %p800_p9 }
  0x20   : > { %s542_s9 = scalar_lea.vmem %s178_s18, 128  ;;  %s676_s25 = smov [#allocation7]  }
  0x21   : > { %p543_p13 = scmp.ne.s32.totalorder %s178_s18, %s542_s9  ;;  %s547_s27 = sshll.u32 %s676_s25, 4  ;;  %s548_s27 = int_to_ptr.vmem [resolvable:$false] %s547_s27 }
  0x22   : > { %s549_s11 = scalar_lea.vmem %s548_s27, 256  ;;  %p550_p4 = scmp.lt.s32.totalorder %s178_s18, %s548_s27 }
  0x23   : > { %p545_p1 = pnand %p543_p13, %p531_p12  ;;  %p551_p5 = scmp.lt.s32.totalorder %s549_s11, %s542_s9 }
  0x25   : > { %p546_p3 = pneg %p545_p1  ;;  %p552_p0 = por %p551_p5, %p550_p4 }
  0x27   : > { %p553_p11 = pnand %p552_p0, %p546_p3 }
  0x29   : > { %556 = shalt.err (!%p553_p11)
}
  0x2a   : > { %455 = dma.hbm_to_vmem [thread:$0]  (!%p800_p9), %s175_s10, 128, %s178_s18, %s166_s8  }
  0x2b   : > { %s188_s7 = scalar_lea.vmem [#allocation8], %s426_s5  ;;  %s185_s4 = scalar_lea.sflag [#allocation9], %s779_s28 }
  0x2c   : > { %s196_s30 = sshll.u32 %s188_s7, 4  ;;  %s677_s25 = smov [#allocation8]   ;;  %s197_s30 = int_to_ptr.vmem [resolvable:$true] %s196_s30 }
  0x2d   : > { %s570_s0 = scalar_lea.vmem %s197_s30, 128  ;;  %s575_s9 = sshll.u32 %s677_s25, 4  ;;  %s576_s9 = int_to_ptr.vmem [resolvable:$false] %s575_s9 }
  0x2e   : > { %p571_p13 = scmp.ne.s32.totalorder %s197_s30, %s570_s0  ;;  %s577_s27 = scalar_lea.vmem %s576_s9, 256 }
  0x2f   : > { %p578_p11 = scmp.lt.s32.totalorder %s197_s30, %s576_s9  ;;  %p579_p3 = scmp.lt.s32.totalorder %s577_s27, %s570_s0 }
  0x30   : > { %p573_p1 = pnand %p571_p13, %p531_p12 }
  0x31   : > { %p580_p4 = por %p579_p3, %p578_p11 }
  0x32   : > { %p574_p8 = pneg %p573_p1 }
  0x34   : > { %p581_p5 = pnand %p580_p4, %p574_p8 }
  0x36   : > { %584 = shalt.err (!%p581_p5)
}
  0x37   : > { %458 = dma.hbm_to_vmem [thread:$0]  (!%p800_p9), %s807_s6, 128, %s197_s30, %s185_s4  }
  0x38   : > { %205 = sbr.rel (%p758_p10) target bundleno = 268 (0x10c), region = 32 }
  0x3d   : > { %636 = dma.done.wait (%p735_p2), [#allocation6], 16  }
  0x3e   : > { %638 = vsyncadd (%p735_p2), [#allocation6], 4294967280  ;;  %s831_s28 = sand.u32 1, %s657_s13  }
  0x3f   : > { %s432_s0 = sshll.u32 %s831_s28, 3  ;;  %s212_s5 = scalar_lea.sflag [#allocation4], %s831_s28 }
  0x40   : > { %s215_s10 = scalar_lea.vmem [#allocation7], %s432_s0 }
  0x41   : > { %640 = dma.done.wait (%p742_p6), %s212_s5, 128  }
  0x42   : > { %642 = vsyncadd (%p742_p6), %s212_s5, 4294967168  ;;  %s221_s24 = scalar_lea.sflag [#allocation9], %s831_s28  ;;  %s224_s18 = scalar_lea.vmem [#allocation8], %s432_s0 }
  0x43   : > { %644 = dma.done.wait (%p742_p6), %s221_s24, 128  }
  0x44   : > { %646 = vsyncadd (%p742_p6), %s221_s24, 4294967168 }
  0x45   : > { %229 = sfence }
  0x46   : > { %v257_v0 = vld [vmem:[%s215_s10] sm:$0xff]  ;;  %v258_v1 = vld [vmem:[%s224_s18] sm:$0xff]  ;;  %s284_s20 = sld [smem:[#allocation3 + %s665_s15]]  ;;  %s435_s21 = sshll.u32 %s665_s15, 4 }
  0x47   : > { %v259_v2 = vsub.f32 %v257_v0, %v258_v1  ;;  %s251_s29 = scalar_lea.vmem [#allocation10], %s831_s28  ;;  %s308_s7 = scalar_lea.hbm %s889_s3, %s435_s21 }
  0x48   : > { %s310_s6 = sshll.u32 %s251_s29, 4  ;;  %s298_s30 = scalar_lea.sflag [#allocation5], %s831_s28  ;;  %s311_s6 = int_to_ptr.vmem [resolvable:$true] %s310_s6 }
  0x49   : > { %v260_v3 = vadd.f32 1e-06, %v259_v2  ;;  %s585_s4 = scalar_lea.vmem %s311_s6, 16  ;;  %s678_s25 = smov [#allocation10]  }
  0x4a   : > { %p586_p2 = scmp.ne.s32.totalorder %s311_s6, %s585_s4  ;;  %s589_s9 = sshll.u32 %s678_s25, 4  ;;  %s590_s9 = int_to_ptr.vmem [resolvable:$false] %s589_s9 }
  0x4b   : > { %v262_v4 = vmul.f32 %v260_v3, %v260_v3  ;;  %s591_s15 = scalar_lea.vmem %s590_s9, 32  ;;  %p592_p10 = scmp.lt.s32.totalorder %s311_s6, %s590_s9 }
  0x4c   : > { %v285_v15 = vstv %s284_s20  ;;  %p587_p6 = pnand %p586_p2, %p749_p7  ;;  %p593_p9 = scmp.lt.s32.totalorder %s591_s15, %s585_s4 }
  0x4d   : > { %v269_v5 = vrot.slane %v262_v4, 4  ;;  %v292_v20 = vsub.f32 1.0, %v285_v15 }
  0x4e   : > { %p588_p8 = pneg %p587_p6  ;;  %p594_p12 = por %p593_p9, %p592_p10 }
  0x4f   : > { %v270_v6 = vadd.f32 %v269_v5, %v262_v4 }
  0x50   : > { %p595_p0 = pnand %p594_p12, %p588_p8 }
  0x51   : > { %v271_v7 = vrot.slane %v270_v6, 2 }
  0x53   : > { %v272_v8 = vadd.f32 %v271_v7, %v270_v6 }
  0x55   : > { %v273_v9 = vrot.slane %v272_v8, 1 }
  0x57   : > { %v274_v10 = vadd.f32 %v273_v9, %v272_v8 }
  0x59   : > { %275 = vadd.xlane.f32.xlu0 %v274_v10 }
  0xe2   : > { %v276_v11 = vpop.xlane.xlu0 %275 }
  0xe3   : > { %516 = vrsqrt.f32 %v276_v11  ;;  %vm279_vm0 = vcmp.eq.f32.partialorder %v276_v11, inf  ;;  %v282_v14 = vand.u32 2147483648, %v276_v11  ;;  %vm281_vm1 = vcmp.eq.f32.partialorder %v276_v11, 0.0 }
  0xf0   : > { %v517_v12 = vpop.eup %516 }
  0xf1   : > { %v278_v13 = vmul.f32 %v517_v12, %v276_v11 }
  0xf3   : > { %v280_v16 = vsel %vm279_vm0, %v276_v11, %v278_v13 }
  0xf4   : > { %v283_v17 = vsel %vm281_vm1, %v282_v14, %v280_v16 }
  0xf5   : > { %v434_v18 = vadd.f32 -0.3, %v283_v17  ;;  %v288_v19 = vsub.f32 2.0, %v283_v17 }
  0xf7   : > { %v287_v21 = vmax.f32 %v434_v18, 0.0  ;;  %v289_v22 = vmax.f32 %v288_v19, 0.0 }
  0xf9   : > { %v290_v23 = vmul.f32 %v287_v21, %v285_v15  ;;  %v293_v24 = vmul.f32 %v292_v20, %v289_v22 }
  0xfb   : > { %v291_v25 = vmul.f32 %v290_v23, %v287_v21  ;;  %v294_v26 = vmul.f32 %v293_v24, %v289_v22 }
  0xfd   : > { %v295_v27 = vadd.f32 %v294_v26, %v291_v25 }
  0xff   : > { %296 = vst [vmem:[%s251_s29] sm:$0x1] %v295_v27 }
 0x100   : > { %598 = shalt.err (!%p595_p0)
}
 0x101   : > { %s599_s27 = scalar_lea.hbm %s308_s7, 16  ;;  %s603_s5 = scalar_lea.hbm %s889_s3, 32 }
 0x102   : > { %p600_p13 = scmp.ne.s32.totalorder %s308_s7, %s599_s27  ;;  %p604_p3 = scmp.lt.s32.totalorder %s308_s7, %s889_s3 }
 0x103   : > { %p605_p4 = scmp.lt.s32.totalorder %s603_s5, %s599_s27 }
 0x104   : > { %p601_p1 = pnand %p600_p13, %p749_p7 }
 0x105   : > { %p606_p5 = por %p605_p4, %p604_p3 }
 0x106   : > { %p602_p11 = pneg %p601_p1 }
 0x108   : > { %p607_p2 = pnand %p606_p5, %p602_p11 }
 0x10a   : > { %610 = shalt.err (!%p607_p2)
}
 0x10b   : > { %446 = dma.vmem_to_hbm [thread:$0]  (%p749_p7), %s311_s6, 16, %s308_s7, %s298_s30  }
 0x10c PF: > { %s322_s18 = sand.u32 1, %s653_s12   ;;  %p899_p6 = scmp.ne.s32.totalorder %s894_s23, 0 }
 0x10d   : > { %p900_p8 = scmp.ge.s32.totalorder %s673_s17, 2  ;;  %s323_s20 = scalar_lea.sflag [#allocation5], %s322_s18 }
 0x10f   : > { %p460_p10 = pnand %p900_p8, %p899_p6 }
 0x111   : > { %p461_p9 = pneg %p460_p10 }
 0x113   : > { %648 = dma.done.wait (%p461_p9), %s323_s20, 16  }
 0x114   : > { %650 = vsyncadd (%p461_p9), %s323_s20, 4294967280  ;;  %s23_s17 = sadd.s32 1, %s673_s17   ;;  %s901_s12 = smov %s657_s13 }
 0x115   : > { %p20_p12 = scmp.ge.s32.totalorder %s23_s17, 4   ;;  %s902_s13 = smov %s661_s14 }
 0x116   : > { %s903_s14 = smov %s794_s19  ;;  %s904_s15 = smov %s669_s16 }
 0x117   : > { %s905_s16 = smov %s907_s26  ;;  %22 = sbr.rel (!%p20_p12) target bundleno = 11 (0xb), region = 103 }
 0x11c   :  { %327 = vsyncpa [#allocation4], 1 }
 0x11d   :  { %329 = vsyncpa [#allocation4 + $0x1], 1 }
 0x11e   :  { %330 = vsyncpa [#allocation9], 1 }
 0x11f   :  { %332 = vsyncpa [#allocation9 + $0x1], 1 }
 0x120   :  { %333 = vsyncpa [#allocation5], 1 }
 0x121   :  { %335 = vsyncpa [#allocation5 + $0x1], 1 }
 0x122   :  { %336 = vsyncpa [#allocation6], 1 }
 0x123   :  { %338 = vsyncpa [#allocation6 + $0x1], 1 }

</bundles_post_ra>
